<compile_context>
chip_gen: v7x
topology: tpu7x:2x2x1
jax: 0.10.0
libtpu: 0.0.40
codegen_flags: <defaults>
</compile_context>

<pallas_src>
import functools

import jax
import jax.numpy as jnp
from jax import lax
from jax.experimental import pallas as pl
from jax.experimental.pallas import tpu as pltpu


def _mlp_kernel(x_ref, w1_ref, b1_ref, w2_ref, b2_ref, w3_ref, b3_ref, ot_ref):
    # x_ref: natural-layout (bn, d_in) tile. Contract the last dims of W1 and x so the
    # relayout to batch-on-lanes rides the MXU: h1^T = W1 @ x^T  -> (16, bn).
    h = lax.dot_general(
        w1_ref[...], x_ref[...],
        dimension_numbers=(((1,), (1,)), ((), ())),
        preferred_element_type=jnp.float32)
    h = jnp.tanh(h + b1_ref[...])
    # Layer 2: h2^T = tanh(W2 @ h1^T + b2) -> (8, bn)
    h = jnp.dot(w2_ref[...], h, preferred_element_type=jnp.float32)
    h = jnp.tanh(h + b2_ref[...])
    # Layer 3: h3^T = tanh(W3 @ h2^T + b3) -> (2, bn), lane-dense store
    h = jnp.dot(w3_ref[...], h, preferred_element_type=jnp.float32)
    h = jnp.tanh(h + b3_ref[...])
    ot_ref[...] = h.astype(ot_ref.dtype)


def _num_tensorcores():
    """Megacore detection: v4/v5p/v7x have 2 TensorCores per chip; v5e/v6e have 1."""
    try:
        kind = jax.devices()[0].device_kind.lower()
    except Exception:
        return 1
    if "lite" in kind or "v5e" in kind or "v6e" in kind:
        return 1  # single-TensorCore chips: never shrink the batch tile
    if "v4" in kind or "v5p" in kind or "7" in kind:
        return 2  # megacore: two TensorCores share the "parallel" grid axis
    return 1


@functools.partial(jax.jit, static_argnames=("block_n",))
def mlp_forward(x, params, block_n=16384):
    """x: [N, attrs_dim] float32. params: [(W [out,in], b [out,1]) x 3]. Returns [N, 2]."""
    (w1, b1), (w2, b2), (w3, b3) = params
    n, d_in = x.shape
    h1, h2, d_out = w1.shape[0], w2.shape[0], w3.shape[0]

    # --- batch tile sizing: lane-aligned, VMEM-budgeted, generation-aware -------------
    block_n = max(128, (int(block_n) // 128) * 128)      # keep the BlockSpec 128-divisible
    n_up = pl.cdiv(n, 128) * 128
    bn = min(block_n, n_up)

    # Per-batch-column VMEM bytes: double-buffered x tile + double-buffered out tile
    # + materialized (h1, h2, out) intermediates + slack. Cap bn so a large attrs_dim
    # can't blow past scoped VMEM (v7x has only 64 MiB physical).
    per_col = 4 * (2 * d_in + 2 * d_out + (h1 + h2 + d_out) + 8)
    budget = 24 * (1 << 20)
    bn = min(bn, max(128, (budget // per_col) // 128 * 128))

    # Multi-TC chips: aim for >=2 grid steps per core (keeps each core's input DMA
    # double-buffered). Single-TC chips keep the largest tile (fewer 0.35us steps).
    cores = _num_tensorcores()
    if cores > 1 and n >= 2 * cores * 128:
        bn = min(bn, max(128, (n // (2 * cores)) // 128 * 128))

    grid = (pl.cdiv(n, bn),)          # ragged last block handled by Pallas; no jnp.pad pass
    resident = lambda i: (0, 0)       # weights/biases stay resident in VMEM across steps

    weight_bytes = 4 * (w1.size + b1.size + w2.size + b2.size + w3.size + b3.size)
    est_vmem = per_col * bn + weight_bytes + (2 << 20)
    vmem_limit = int(min(48 << 20, max(32 << 20, 2 * est_vmem)))

    cost = pl.CostEstimate(
        flops=2 * n * (d_in * h1 + h1 * h2 + h2 * d_out),
        transcendentals=n * (h1 + h2 + d_out),
        bytes_accessed=4 * n * (d_in + d_out) + weight_bytes,
    )

    out_t = pl.pallas_call(
        _mlp_kernel,
        out_shape=jax.ShapeDtypeStruct((d_out, n), x.dtype),
        grid_spec=pltpu.PrefetchScalarGridSpec(
            num_scalar_prefetch=0,
            grid=grid,
            in_specs=[
                pl.BlockSpec((bn, d_in), lambda i: (i, 0)),   # natural-layout x tile
                pl.BlockSpec(w1.shape, resident),
                pl.BlockSpec(b1.shape, resident),
                pl.BlockSpec(w2.shape, resident),
                pl.BlockSpec(b2.shape, resident),
                pl.BlockSpec(w3.shape, resident),
                pl.BlockSpec(b3.shape, resident),
            ],
            out_specs=pl.BlockSpec((d_out, bn), lambda i: (0, i)),  # lane-dense store
        ),
        compiler_params=pltpu.CompilerParams(
            dimension_semantics=("parallel",),
            vmem_limit_bytes=vmem_limit,
        ),
        cost_estimate=cost,
    )(x, w1, b1, w2, b2, w3, b3)

    # Consumer layout is [N, d_out]; this trailing transpose moves only 4*d_out*N bytes
    # (negligible next to the 4*attrs_dim*N input read).
    return out_t.T


def init_mlp_params(key, attrs_dim, dim_list=(16, 8, 2)):
    """Deterministic init matching nn.Linear default: U(-1/sqrt(fan_in), 1/sqrt(fan_in)).
    Weights stored in PyTorch layout [out_dim, in_dim]; biases as [out_dim, 1]."""
    dims = [attrs_dim] + list(dim_list)
    params = []
    for i in range(len(dim_list)):
        fan_in, fan_out = dims[i], dims[i + 1]
        key, kw, kb = jax.random.split(key, 3)
        bound = 1.0 / jnp.sqrt(fan_in)
        w = jax.random.uniform(kw, (fan_out, fan_in), jnp.float32, -bound, bound)
        b = jax.random.uniform(kb, (fan_out, 1), jnp.float32, -bound, bound)
        params.append((w, b))
    return params


def reference_mlp(x, params):
    h = x
    for w, b in params:
        h = jnp.tanh(h @ w.T + b[:, 0])
    return h


if __name__ == "__main__":
    key = jax.random.PRNGKey(0)
    attrs_dim = 32
    n = 300  # ragged batch: exercises the partial-last-block path (no jnp.pad)

    key, kx = jax.random.split(key)
    x = jax.random.normal(kx, (n, attrs_dim), jnp.float32)
    params = init_mlp_params(key, attrs_dim, (16, 8, 2))

    out = mlp_forward(x, params)
    out = jax.block_until_ready(out)

    ref = reference_mlp(x, params)
    assert out.shape == (n, 2), out.shape
    assert jnp.allclose(out, ref, atol=1e-5, rtol=1e-5), "mismatch vs reference"
    print("KERNEL_OK")
</pallas_src>

<mosaic_0001>
module attributes {stable_mosaic.version = 11 : i64} {
  func.func @_mlp_kernel(%arg0: i32, %arg1: memref<384x32xf32, #tpu.memory_space<vmem>>, %arg2: memref<16x32xf32, #tpu.memory_space<vmem>>, %arg3: memref<16x1xf32, #tpu.memory_space<vmem>>, %arg4: memref<8x16xf32, #tpu.memory_space<vmem>>, %arg5: memref<8x1xf32, #tpu.memory_space<vmem>>, %arg6: memref<2x8xf32, #tpu.memory_space<vmem>>, %arg7: memref<2x1xf32, #tpu.memory_space<vmem>>, %arg8: memref<2x384xf32, #tpu.memory_space<vmem>>) attributes {dimension_semantics = [#tpu.dimension_semantics<parallel>], iteration_bounds = array<i64: 1>, scalar_prefetch = 0 : i64, scratch_operands = 0 : i64, tpu.core_type = #tpu.core_type<tc>, window_params = [{transform_indices = @transform_0, window_bounds = array<i64: 384, 32>}, {pipeline_mode = #tpu.pipeline_mode<synchronous>, transform_indices = @transform_1, window_bounds = array<i64: 16, 32>}, {pipeline_mode = #tpu.pipeline_mode<synchronous>, transform_indices = @transform_2, window_bounds = array<i64: 16, 1>}, {pipeline_mode = #tpu.pipeline_mode<synchronous>, transform_indices = @transform_3, window_bounds = array<i64: 8, 16>}, {pipeline_mode = #tpu.pipeline_mode<synchronous>, transform_indices = @transform_4, window_bounds = array<i64: 8, 1>}, {pipeline_mode = #tpu.pipeline_mode<synchronous>, transform_indices = @transform_5, window_bounds = array<i64: 2, 8>}, {pipeline_mode = #tpu.pipeline_mode<synchronous>, transform_indices = @transform_6, window_bounds = array<i64: 2, 1>}, {transform_indices = @transform_7, window_bounds = array<i64: 2, 384>}]} {
    %c0 = arith.constant 0 : index
    %c0_0 = arith.constant 0 : index
    %0 = vector.load %arg2[%c0, %c0_0] : memref<16x32xf32, #tpu.memory_space<vmem>>, vector<16x32xf32>
    %c0_1 = arith.constant 0 : index
    %c0_2 = arith.constant 0 : index
    %1 = vector.load %arg1[%c0_1, %c0_2] : memref<384x32xf32, #tpu.memory_space<vmem>>, vector<384x32xf32>
    %cst = arith.constant dense<0.000000e+00> : vector<16x384xf32>
    %2 = tpu.matmul %0, %1, %cst {dimension_numbers = #tpu.dot_dimension_numbers<[1], [1], [0], [0], [0, 0, 1, 0], [], []>} : vector<16x32xf32>, vector<384x32xf32>, vector<16x384xf32> -> vector<16x384xf32>
    %c0_3 = arith.constant 0 : index
    %c0_4 = arith.constant 0 : index
    %3 = vector.load %arg3[%c0_3, %c0_4] : memref<16x1xf32, #tpu.memory_space<vmem>>, vector<16x1xf32>
    %4 = vector.broadcast %3 : vector<16x1xf32> to vector<16x384xf32>
    %5 = arith.addf %2, %4 : vector<16x384xf32>
    %6 = math.tanh %5 : vector<16x384xf32>
    %c0_5 = arith.constant 0 : index
    %c0_6 = arith.constant 0 : index
    %7 = vector.load %arg4[%c0_5, %c0_6] : memref<8x16xf32, #tpu.memory_space<vmem>>, vector<8x16xf32>
    %cst_7 = arith.constant dense<0.000000e+00> : vector<8x384xf32>
    %8 = tpu.matmul %7, %6, %cst_7 {dimension_numbers = #tpu.dot_dimension_numbers<[1], [0], [0], [1], [0, 0, 1, 1], [], []>} : vector<8x16xf32>, vector<16x384xf32>, vector<8x384xf32> -> vector<8x384xf32>
    %c0_8 = arith.constant 0 : index
    %c0_9 = arith.constant 0 : index
    %9 = vector.load %arg5[%c0_8, %c0_9] : memref<8x1xf32, #tpu.memory_space<vmem>>, vector<8x1xf32>
    %10 = vector.broadcast %9 : vector<8x1xf32> to vector<8x384xf32>
    %11 = arith.addf %8, %10 : vector<8x384xf32>
    %12 = math.tanh %11 : vector<8x384xf32>
    %c0_10 = arith.constant 0 : index
    %c0_11 = arith.constant 0 : index
    %13 = vector.load %arg6[%c0_10, %c0_11] : memref<2x8xf32, #tpu.memory_space<vmem>>, vector<2x8xf32>
    %cst_12 = arith.constant dense<0.000000e+00> : vector<2x384xf32>
    %14 = tpu.matmul %13, %12, %cst_12 {dimension_numbers = #tpu.dot_dimension_numbers<[1], [0], [0], [1], [0, 0, 1, 1], [], []>} : vector<2x8xf32>, vector<8x384xf32>, vector<2x384xf32> -> vector<2x384xf32>
    %c0_13 = arith.constant 0 : index
    %c0_14 = arith.constant 0 : index
    %15 = vector.load %arg7[%c0_13, %c0_14] : memref<2x1xf32, #tpu.memory_space<vmem>>, vector<2x1xf32>
    %16 = vector.broadcast %15 : vector<2x1xf32> to vector<2x384xf32>
    %17 = arith.addf %14, %16 : vector<2x384xf32>
    %18 = math.tanh %17 : vector<2x384xf32>
    %c0_15 = arith.constant 0 : index
    %c0_16 = arith.constant 0 : index
    %19 = vector.load %arg8[%c0_15, %c0_16] : memref<2x384xf32, #tpu.memory_space<vmem>>, vector<2x384xf32>
    tpu.vector_store %arg8[%c0_15, %c0_16], %18 {strides = array<i32>} : memref<2x384xf32, #tpu.memory_space<vmem>>, vector<2x384xf32>,
    return
  }
  func.func @transform_0(%arg0: i32) -> (i32, i32) {
    %c0_i32 = arith.constant 0 : i32
    %c0_i32_0 = arith.constant 0 : i32
    return %arg0, %c0_i32 : i32, i32
  }
  func.func @transform_1(%arg0: i32) -> (i32, i32) {
    %c0_i32 = arith.constant 0 : i32
    %c0_i32_0 = arith.constant 0 : i32
    %c0_i32_1 = arith.constant 0 : i32
    return %c0_i32, %c0_i32_0 : i32, i32
  }
  func.func @transform_2(%arg0: i32) -> (i32, i32) {
    %c0_i32 = arith.constant 0 : i32
    %c0_i32_0 = arith.constant 0 : i32
    %c0_i32_1 = arith.constant 0 : i32
    return %c0_i32, %c0_i32_0 : i32, i32
  }
  func.func @transform_3(%arg0: i32) -> (i32, i32) {
    %c0_i32 = arith.constant 0 : i32
    %c0_i32_0 = arith.constant 0 : i32
    %c0_i32_1 = arith.constant 0 : i32
    return %c0_i32, %c0_i32_0 : i32, i32
  }
  func.func @transform_4(%arg0: i32) -> (i32, i32) {
    %c0_i32 = arith.constant 0 : i32
    %c0_i32_0 = arith.constant 0 : i32
    %c0_i32_1 = arith.constant 0 : i32
    return %c0_i32, %c0_i32_0 : i32, i32
  }
  func.func @transform_5(%arg0: i32) -> (i32, i32) {
    %c0_i32 = arith.constant 0 : i32
    %c0_i32_0 = arith.constant 0 : i32
    %c0_i32_1 = arith.constant 0 : i32
    return %c0_i32, %c0_i32_0 : i32, i32
  }
  func.func @transform_6(%arg0: i32) -> (i32, i32) {
    %c0_i32 = arith.constant 0 : i32
    %c0_i32_0 = arith.constant 0 : i32
    %c0_i32_1 = arith.constant 0 : i32
    return %c0_i32, %c0_i32_0 : i32, i32
  }
  func.func @transform_7(%arg0: i32) -> (i32, i32) {
    %c0_i32 = arith.constant 0 : i32
    %c0_i32_0 = arith.constant 0 : i32
    return %c0_i32, %arg0 : i32, i32
  }
}

</mosaic_0001>

<bundles_post_ra>
// kernel: mlp_forward.1
= control target key start
LH: loop header
LB: loop body
LE: loop exit
PB: predicated region body
PF: predicated region fallthrough
CT: control target
= control target key end

     0   :  { %vm89_vm0 = vcmask 261120   ;;  %v1064_v7 = vmov 0   ;;  %s1373_s0 = inlined_call_operand.vmem [shape: f32[300,32], index: 0, kind: input, shape index: {}]   ;;  %s1374_s1 = inlined_call_operand.vmem [shape: f32[16,32], index: 1, kind: input, shape index: {}]   ;;  %s1375_s2 = inlined_call_operand.vmem [shape: f32[16,1], index: 2, kind: input, shape index: {}]   ;;  %s1376_s3 = inlined_call_operand.vmem [shape: f32[8,16], index: 3, kind: input, shape index: {}]   ;;  %s1377_s4 = inlined_call_operand.vmem [shape: f32[8,1], index: 4, kind: input, shape index: {}]   ;;  %s1378_s5 = inlined_call_operand.vmem [shape: f32[2,8], index: 5, kind: input, shape index: {}]   ;;  %s1379_s6 = inlined_call_operand.vmem [shape: f32[2,1], index: 6, kind: input, shape index: {}]   ;;  %s1380_s7 = inlined_call_operand.hbm [shape: f32[2,300], index: 7, kind: output, shape index: {}]  }
   0x1   :  { %v45_v0 = vld [vmem:[%s1373_s0 + $0x80] sm:$0xff]  ;;  %v46_v1 = vld [vmem:[%s1373_s0 + $0x88] sm:$0xff]  ;;  %vm1121_vm1 = vmpackc.low %vm89_vm0, %vm89_vm0  ;;  %1014 = vset.pattern.permute.xlu0 %v1064_v7  ;;  %1015 = vset.pattern.permute.xlu1 %v1064_v7 }
   0x2   :  { %v61_v2 = vld [vmem:[%s1373_s0 + $0x100] sm:$0xff]  ;;  %v905_v3 = vpack.c.bf16 %v46_v1, %v45_v0  ;;  %v62_v5 = vld [vmem:[%s1373_s0 + $0x108] sm:$0xff]  ;;  %v47_v10 = vld [vmem:[%s1373_s0 + $0x90] sm:$0xff] }
   0x3   :  { %v29_v6 = vld [vmem:[%s1373_s0] sm:$0xff]  ;;  %v953_v8 = vpack.c.bf16 %v62_v5, %v61_v2  ;;  %v30_v9 = vld [vmem:[%s1373_s0 + $0x8] sm:$0xff]  ;;  %v48_v11 = vld [vmem:[%s1373_s0 + $0x98] sm:$0xff] }
   0x4   :  { %907 = vmatprep.subr.msk.bf16.mxu0 %vm1121_vm1, %v905_v3  ;;  %v908_v12 = vpack.c.bf16 %v30_v9, %v29_v6  ;;  %v911_v13 = vpack.c.bf16 %v48_v11, %v47_v10  ;;  %v63_v14 = vld [vmem:[%s1373_s0 + $0x110] sm:$0xff]  ;;  %v64_v15 = vld [vmem:[%s1373_s0 + $0x118] sm:$0xff]  ;;  %v49_v19 = vld [vmem:[%s1373_s0 + $0xa0] sm:$0xff] }
   0x5   :  { %955 = vmatprep.subr.msk.bf16.mxu1 %vm1121_vm1, %v953_v8  ;;  %v959_v16 = vpack.c.bf16 %v64_v15, %v63_v14  ;;  %v31_v17 = vld [vmem:[%s1373_s0 + $0x10] sm:$0xff]  ;;  %v32_v18 = vld [vmem:[%s1373_s0 + $0x18] sm:$0xff]  ;;  %v50_v20 = vld [vmem:[%s1373_s0 + $0xa8] sm:$0xff] }
   0x6   :  { %910 = vmatpush3.bf16.xpose.msk.msra.mxu0 %vm1121_vm1, %v908_v12  ;;  %958 = vmatpush3.bf16.xpose.msk.msra.mxu1 %vm1121_vm1, %v953_v8  ;;  %v65_v21 = vld [vmem:[%s1373_s0 + $0x120] sm:$0xff]  ;;  %v66_v22 = vld [vmem:[%s1373_s0 + $0x128] sm:$0xff]  ;;  %v914_v23 = vpack.c.bf16 %v32_v18, %v31_v17  ;;  %v917_v24 = vpack.c.bf16 %v50_v20, %v49_v19  ;;  %v51_v28 = vld [vmem:[%s1373_s0 + $0xb0] sm:$0xff] }
   0x7   :  { %913 = vmatprep.subr.msk.bf16.mxu0 %vm1121_vm1, %v911_v13  ;;  %961 = vmatprep.subr.msk.bf16.mxu1 %vm1121_vm1, %v959_v16  ;;  %v965_v25 = vpack.c.bf16 %v66_v22, %v65_v21  ;;  %v33_v26 = vld [vmem:[%s1373_s0 + $0x20] sm:$0xff]  ;;  %v34_v27 = vld [vmem:[%s1373_s0 + $0x28] sm:$0xff]  ;;  %v52_v29 = vld [vmem:[%s1373_s0 + $0xb8] sm:$0xff] }
   0x8   :  { %v67_v30 = vld [vmem:[%s1373_s0 + $0x130] sm:$0xff]  ;;  %v68_v31 = vld [vmem:[%s1373_s0 + $0x138] sm:$0xff]  ;;  %v1205_v32 = vld [vmem:[%s1374_s1] sm:$0xff]  ;;  %v920_v33 = vpack.c.bf16 %v34_v27, %v33_v26 }
   0x9   :  { %831 = vmatprep.mubr.msk.f32.mxu0 %vm89_vm0, %v1205_v32  ;;  %890 = vmatprep.mubr.msk.f32.mxu1 %vm89_vm0, %v1205_v32  ;;  %v77_v34 = vld [vmem:[%s1375_s2] sm:$0xff] }
   0xe   :  { %916 = vmatpush3.bf16.xpose.msk.msra.mxu0 %vm1121_vm1, %v914_v23  ;;  %964 = vmatpush3.bf16.xpose.msk.msra.mxu1 %vm1121_vm1, %v959_v16 }
   0xf   :  { %919 = vmatprep.subr.msk.bf16.mxu0 %vm1121_vm1, %v917_v24  ;;  %967 = vmatprep.subr.msk.bf16.mxu1 %vm1121_vm1, %v965_v25 }
  0x10   :  { %12 = vsyncpa [#allocation3], 0  ;;  %v923_v35 = vpack.c.bf16 %v52_v29, %v51_v28  ;;  %v971_v36 = vpack.c.bf16 %v68_v31, %v67_v30  ;;  %81 = vperm.xlu0 %1014, %v77_v34   ;;  %v78_v37 = vld [vmem:[%s1375_s2 + $0x8] sm:$0xff]  ;;  %v35_v38 = vld [vmem:[%s1373_s0 + $0x30] sm:$0xff]  ;;  %v1065_v15 = vmov 0.0|0.0   ;;  %vm1066_vm2 = vmmov 0  }
  0x11   :  { %v36_v39 = vld [vmem:[%s1373_s0 + $0x38] sm:$0xff]  ;;  %v53_v40 = vld [vmem:[%s1373_s0 + $0xc0] sm:$0xff]  ;;  %v54_v41 = vld [vmem:[%s1373_s0 + $0xc8] sm:$0xff]  ;;  %v1067_v16 = vmov 0.0   ;;  %vm405_vm3 = vcmask 130048   ;;  %vm560_vm4 = vcmask 64512  }
  0x12   :  { %v69_v42 = vld [vmem:[%s1373_s0 + $0x140] sm:$0xff]  ;;  %v70_v43 = vld [vmem:[%s1373_s0 + $0x148] sm:$0xff]  ;;  %v926_v44 = vpack.c.bf16 %v36_v39, %v35_v38  ;;  %v929_v45 = vpack.c.bf16 %v54_v41, %v53_v40  ;;  %v55_v49 = vld [vmem:[%s1373_s0 + $0xd0] sm:$0xff] }
  0x13   :  { %v977_v46 = vpack.c.bf16 %v70_v43, %v69_v42  ;;  %v37_v47 = vld [vmem:[%s1373_s0 + $0x40] sm:$0xff]  ;;  %v38_v48 = vld [vmem:[%s1373_s0 + $0x48] sm:$0xff]  ;;  %v56_v50 = vld [vmem:[%s1373_s0 + $0xd8] sm:$0xff] }
  0x14   :  { %86 = vperm.xlu0 %1014, %v78_v37   ;;  %v71_v51 = vld [vmem:[%s1373_s0 + $0x150] sm:$0xff]  ;;  %v72_v52 = vld [vmem:[%s1373_s0 + $0x158] sm:$0xff]  ;;  %v932_v53 = vpack.c.bf16 %v38_v48, %v37_v47  ;;  %v935_v54 = vpack.c.bf16 %v56_v50, %v55_v49  ;;  %v57_v58 = vld [vmem:[%s1373_s0 + $0xe0] sm:$0xff] }
  0x15   :  { %v983_v55 = vpack.c.bf16 %v72_v52, %v71_v51  ;;  %v39_v56 = vld [vmem:[%s1373_s0 + $0x50] sm:$0xff]  ;;  %v40_v57 = vld [vmem:[%s1373_s0 + $0x58] sm:$0xff]  ;;  %v58_v59 = vld [vmem:[%s1373_s0 + $0xe8] sm:$0xff] }
  0x16   :  { %922 = vmatpush3.bf16.xpose.msk.msra.mxu0 %vm1121_vm1, %v920_v33  ;;  %970 = vmatpush3.bf16.xpose.msk.msra.mxu1 %vm1121_vm1, %v965_v25  ;;  %v73_v60 = vld [vmem:[%s1373_s0 + $0x160] sm:$0xff]  ;;  %v74_v61 = vld [vmem:[%s1373_s0 + $0x168] sm:$0xff]  ;;  %v938_v62 = vpack.c.bf16 %v40_v57, %v39_v56  ;;  %v941_v63 = vpack.c.bf16 %v58_v59, %v57_v58  ;;  %v59_v3 = vld [vmem:[%s1373_s0 + $0xf0] sm:$0xff] }
  0x17   :  { %925 = vmatprep.subr.msk.bf16.mxu0 %vm1121_vm1, %v923_v35  ;;  %973 = vmatprep.subr.msk.bf16.mxu1 %vm1121_vm1, %v971_v36  ;;  %v989_v0 = vpack.c.bf16 %v74_v61, %v73_v60  ;;  %v41_v1 = vld [vmem:[%s1373_s0 + $0x60] sm:$0xff]  ;;  %v42_v2 = vld [vmem:[%s1373_s0 + $0x68] sm:$0xff]  ;;  %v60_v5 = vld [vmem:[%s1373_s0 + $0xf8] sm:$0xff] }
  0x18   :  { %v75_v6 = vld [vmem:[%s1373_s0 + $0x170] sm:$0xff]  ;;  %v76_v7 = vld [vmem:[%s1373_s0 + $0x178] sm:$0xff]  ;;  %v944_v8 = vpack.c.bf16 %v42_v2, %v41_v1  ;;  %v947_v9 = vpack.c.bf16 %v60_v5, %v59_v3  ;;  %v28_v14 = vld [vmem:[%s1374_s1 + $0x8] sm:$0xff] }
  0x19   :  { %v995_v10 = vpack.c.bf16 %v76_v7, %v75_v6  ;;  %v43_v11 = vld [vmem:[%s1373_s0 + $0x70] sm:$0xff]  ;;  %v44_v12 = vld [vmem:[%s1373_s0 + $0x78] sm:$0xff]  ;;  %v399_v4 = vld [vmem:[%s1377_s4] sm:$0xff] }
  0x1a   :  { %v950_v13 = vpack.c.bf16 %v44_v12, %v43_v11  ;;  %402 = vperm.xlu1 %1015, %v399_v4   ;;  %v554_v17 = vld [vmem:[%s1379_s6] sm:$0x3] }
  0x1b   :  { %v398_v40 = vld [vmem:[%s1376_s3] sm:$0xff] }
  0x1c   :  { %v553_v50 = vld [vmem:[%s1378_s5] sm:$0x3]  ;;  %s1069_s5 = smov [#allocation2]  }
  0x1d   :  { %s735_s13 = sshll.u32 %s1069_s5, 4  ;;  %s736_s13 = int_to_ptr.vmem [resolvable:$true] %s735_s13 }
  0x1e   :  { %928 = vmatpush3.bf16.xpose.msk.msra.mxu0 %vm1121_vm1, %v926_v44  ;;  %976 = vmatpush3.bf16.xpose.msk.msra.mxu1 %vm1121_vm1, %v971_v36  ;;  %s1040_s14 = scalar_lea.vmem %s736_s13, 96  ;;  %p1045_p1 = scmp.lt.s32.totalorder %s736_s13, %s736_s13 }
  0x1f   :  { %931 = vmatprep.subr.msk.bf16.mxu0 %vm1121_vm1, %v929_v45  ;;  %979 = vmatprep.subr.msk.bf16.mxu1 %vm1121_vm1, %v977_v46  ;;  %p1041_p0 = scmp.ne.s32.totalorder %s736_s13, %s1040_s14  ;;  %p1046_p2 = scmp.lt.s32.totalorder %s1040_s14, %s1040_s14 }
  0x20   :  { %557 = vperm.xlu1 %1015, %v554_v17  }
  0x21   :  { %p1047_p3 = por %p1046_p2, %p1045_p1 }
  0x23   :  { %p1048_p4 = pnand %p1047_p3, %p1041_p0 }
  0x26   :  { %934 = vmatpush3.bf16.xpose.msk.msra.mxu0 %vm1121_vm1, %v932_v53  ;;  %982 = vmatpush3.bf16.xpose.msk.msra.mxu1 %vm1121_vm1, %v977_v46 }
  0x27   :  { %937 = vmatprep.subr.msk.bf16.mxu0 %vm1121_vm1, %v935_v54  ;;  %985 = vmatprep.subr.msk.bf16.mxu1 %vm1121_vm1, %v983_v55 }
  0x2e   :  { %940 = vmatpush3.bf16.xpose.msk.msra.mxu0 %vm1121_vm1, %v938_v62  ;;  %988 = vmatpush3.bf16.xpose.msk.msra.mxu1 %vm1121_vm1, %v983_v55  ;;  %v1068_v62 = vmov 1983009808  }
  0x2f   :  { %943 = vmatprep.subr.msk.bf16.mxu0 %vm1121_vm1, %v941_v63  ;;  %991 = vmatprep.subr.msk.bf16.mxu1 %vm1121_vm1, %v989_v0  ;;  %v713_v63 = vunpack.c.l.s4 %v1068_v62 }
  0x31   :  { %v714_v1 = vunpack.c.0.s8 %v713_v63 }
  0x36   :  { %946 = vmatpush3.bf16.xpose.msk.msra.mxu0 %vm1121_vm1, %v944_v8  ;;  %994 = vmatpush3.bf16.xpose.msk.msra.mxu1 %vm1121_vm1, %v989_v0  ;;  %v715_v0 = vlaneseq }
  0x37   :  { %949 = vmatprep.subr.msk.bf16.mxu0 %vm1121_vm1, %v947_v9  ;;  %997 = vmatprep.subr.msk.bf16.mxu1 %vm1121_vm1, %v995_v10 }
  0x38   :  { %v716_v2 = vshrl.u32 %v715_v0, 7 }
  0x3a   :  { %v717_v6 = vsub.s32 %v714_v1, %v716_v2 }
  0x3e   :  { %952 = vmatpush3.bf16.xpose.msk.msra.mxu0 %vm1121_vm1, %v950_v13  ;;  %1000 = vmatpush3.bf16.xpose.msk.msra.mxu1 %vm1121_vm1, %v995_v10 }
  0x3f   :  { %1005 = vmatprep.subr.bf16.mxu0 %v1065_v15 }
  0x45   :  { %832 = vmatmul.mubr.msk.f32.vlgmr.msra.gmra.mrb[0].mxu0 %vm89_vm0, %v1205_v32  ;;  %891 = vmatmul.mubr.msk.f32.vlgmr.msra.gmra.mrb[0].mxu1 %vm89_vm0, %v28_v14 }
  0x46   :  { %833 = vmatprep.mubr.msk.f32.mxu0 %vm89_vm0, %v28_v14  ;;  %473 = vmatprep.mubr.f32.mxu1 %v1067_v16 }
  0x49   :  { %834 = vmatmul.mubr.msk.f32.gmra.mrb[2].mxu0 %vm89_vm0, %v28_v14 }
  0x4a   :  { %897 = vmatprep.mubr.msk.f32.mxu0 %vm1066_vm2, %v1067_v16 }
  0x8f   :  { %v82_v18 = vpop.permute.xlu0 %81 }
  0x93   :  { %v87_v19 = vpop.permute.xlu0 %86 }
  0x99   :  { %v403_v42 = vpop.permute.xlu1 %402 }
  0x9f   :  { %v558_v56 = vpop.permute.xlu1 %557 }
 0x118   :  { %v306_v20 = vpop.f32.mrb[0].mxu0  ;;  %v892_v21 = vpop.f32.mrb[0].mxu1 }
 0x119   :  { %v307_v22 = vadd.f32 %v306_v20, %v82_v18  ;;  %v389_v23 = vadd.f32 %v892_v21, %v87_v19  ;;  %v308_v24 = vpop.f32.mrb[1].mxu0  ;;  %v383_v25 = vpop.f32.mrb[1].mxu1 }
 0x11a   :  { %v309_v26 = vadd.f32 %v308_v24, %v82_v18  ;;  %v384_v27 = vadd.f32 %v383_v25, %v82_v18 }
 0x11b   :  { %1016 = vtanh.f32 %v307_v22 }
 0x11c   :  { %1018 = vtanh.f32 %v389_v23  ;;  %v312_v28 = vpop.f32.mrb[2].mxu0 }
 0x11d   :  { %1020 = vtanh.f32 %v309_v26  ;;  %v313_v29 = vadd.f32 %v312_v28, %v87_v19  ;;  %v314_v30 = vpop.f32.mrb[3].mxu0 }
 0x11e   :  { %1022 = vtanh.f32 %v384_v27  ;;  %v315_v31 = vadd.f32 %v314_v30, %v87_v19 }
 0x11f   :  { %1024 = vtanh.f32 %v313_v29 }
 0x120   :  { %1026 = vtanh.f32 %v315_v31 }
 0x125   :  { %v1017_v32 = vpop.eup %1016 }
 0x126   :  { %v1019_v33 = vpop.eup %1018 }
 0x127   :  { %v1021_v34 = vpop.eup %1020 }
 0x128   :  { %v1023_v35 = vpop.eup %1022 }
 0x129   :  { %v1025_v36 = vpop.eup %1024  ;;  %v1006_v37 = vpack.c.bf16 %v1019_v33, %v1023_v35 }
 0x12a   :  { %v1027_v38 = vpop.eup %1026  ;;  %v1003_v39 = vpack.c.bf16 %v1025_v36, %v1017_v32 }
 0x12b   :  { %1007 = vmatpush3.bf16.msra.mxu0 %v1006_v37  ;;  %v1001_v41 = vpack.c.bf16 %v1027_v38, %v1021_v34 }
 0x12c   :  { %900 = vmatprep.subr.mxu0 %v1067_v16 }
 0x12d   :  { %1002 = vmatprep.subr.bf16.mxu1 %v1001_v41 }
 0x12e   :  { %898 = vmatmul.mubr.msk.f32.vlgmr.msra.gmra.mrb[4].mxu0 %vm405_vm3, %v398_v40  ;;  %1004 = vmatpush1.bf16.msra.mxu1 %v1003_v39 }
 0x12f   :  { %902 = vmatprep.mubr.msk.f32.mxu0 %vm1066_vm2, %v1067_v16 }
 0x131   :  { %795 = vmatmul.mubr.msk.f32.vlgmr.msra.gmra.mrb[2].mxu1 %vm405_vm3, %v398_v40 }
 0x132   :  { %628 = vmatprep.mubr.f32.mxu1 %v1067_v16 }
 0x201   :  { %v546_v43 = vpop.f32.mrb[4].mxu0 }
 0x202   :  { %v547_v44 = vadd.f32 %v546_v43, %v403_v42  ;;  %v899_v45 = vpop.f32.mrb[5].mxu0 }
 0x204   :  { %1028 = vtanh.f32 %v547_v44  ;;  %v475_v46 = vpop.f32.mrb[2].mxu1 }
 0x205   :  { %v476_v47 = vadd.f32 %v475_v46, %v403_v42  ;;  %v477_v48 = vpop.f32.mrb[3].mxu1 }
 0x206   :  { %v478_v49 = vadd.f32 %v477_v48, %v403_v42 }
 0x208   :  { %1030 = vtanh.f32 %v478_v49 }
 0x209   :  { %1032 = vtanh.f32 %v476_v47 }
 0x20e   :  { %v1029_v51 = vpop.eup %1028 }
 0x20f   :  { %901 = vmatpush3.msra.mxu0 %v1029_v51 }
 0x210   :  { %903 = vmatmul.mubr.msk.f32.vlgmr.msra.gmra.mrb[6].mxu0 %vm560_vm4, %v553_v50 }
 0x212   :  { %v1031_v52 = vpop.eup %1030 }
 0x213   :  { %v1033_v53 = vpop.eup %1032  ;;  %564 = vmatprep.subr.mxu1 %v1031_v52 }
 0x214   :  { %565 = vmatpush1.msra.mxu1 %v1033_v53 }
 0x215   :  { %797 = vmatmul.mubr.msk.f32.vlgmr.msra.gmra.mrb[4].mxu1 %vm560_vm4, %v553_v50 }
 0x2e3   :  { %v701_v54 = vpop.f32.mrb[6].mxu0 }
 0x2e4   :  { %v904_v55 = vpop.f32.mrb[7].mxu0  ;;  %v702_v57 = vadd.f32 %v701_v54, %v558_v56 }
 0x2e6   :  { %1034 = vtanh.f32 %v702_v57 }
 0x2e8   :  { %v630_v58 = vpop.f32.mrb[4].mxu1 }
 0x2e9   :  { %v631_v59 = vadd.f32 %v630_v58, %v558_v56  ;;  %v632_v60 = vpop.f32.mrb[5].mxu1 }
 0x2ea   :  { %v633_v61 = vadd.f32 %v632_v60, %v558_v56 }
 0x2eb   :  { %1036 = vtanh.f32 %v631_v59 }
 0x2ec   :  { %1038 = vtanh.f32 %v633_v61 }
 0x2f0   :  { %v1035_v3 = vpop.eup %1034 }
 0x2f1   :  { %v725_v10 = vrot.slane %v1035_v3, %v717_v6 }
 0x2f5   :  { %v1037_v5 = vpop.eup %1036 }
 0x2f6   :  { %v1039_v7 = vpop.eup %1038 }
 0x2f7   :  { %v711_v8 = vcombine.low %v1037_v5, %v1039_v7 }
 0x2f9   :  { %v718_v9 = vrot.slane %v711_v8, %v717_v6 }
 0x2fb   :  { %v726_v11 = vcombine.low %v718_v9, %v725_v10 }
 0x2fd   :  { %728 = vst [vmem:[#allocation2] sm:$0x3f] %v726_v11 }
 0x2fe   :  { %1051 = shalt.err (!%p1048_p4)
}
 0x2ff   :  { %s1052_s17 = scalar_lea.hbm %s1380_s7, 96 }
 0x300   :  { %p1053_p5 = scmp.ne.s32.totalorder %s1380_s7, %s1052_s17  ;;  %p1056_p6 = scmp.lt.u32.totalorder %s1052_s17, %s1380_s7 }
 0x302   :  { %p1058_p7 = pnand %p1056_p6, %p1053_p5 }
 0x304   :  { %1061 = shalt.err (!%p1058_p7)
}
 0x305   :  { %738 = dma.vmem_to_hbm [thread:$0]  %s736_s13, 96, %s1380_s7, [#allocation3]  }
 0x306   :  { %1062 = dma.done.wait [#allocation3], 96  }
 0x307   :  { %1063 = vsyncadd [#allocation3], 4294967200 }
 0x308   :  { %742 = vsyncpa [#allocation3], 1 }

</bundles_post_ra>
